<compile_context>
chip_gen: v6e
topology: v6e:2x2x1
jax: 0.10.0
libtpu: 0.0.40
codegen_flags: <defaults>
</compile_context>

<pallas_src>
import functools

import jax
import jax.numpy as jnp
from jax.experimental import pallas as pl
from jax.experimental.pallas import tpu as pltpu


def _round_up(x, m):
    return (x + m - 1) // m * m


def _cdiv(a, b):
    return -(-a // b)


# ----------------------------------------------------------------------------
# Generation-aware defaults: (generation, tm_pref, tff_pref, vmem_limit_bytes)
# ----------------------------------------------------------------------------
def _tpu_config():
    gen = None
    try:
        kind = jax.devices()[0].device_kind.lower()
        if "v5 lite" in kind or "v5e" in kind or "v5lite" in kind:
            gen = "v5e"
        elif "v6" in kind:
            gen = "v6e"
        elif "v7" in kind or "7x" in kind:
            gen = "v7x"
    except Exception:
        pass
    if gen == "v6e":
        # 918 TF/s vs ~1.4 TB/s -> need large row tile; 128 MiB VMEM fits it.
        return gen, 1024, 1024, 100 * 1024 * 1024
    if gen == "v5e":
        # 197 TF/s -> tm=512 already compute-bound; prefer fewer k steps.
        return gen, 512, 1024, 100 * 1024 * 1024
    if gen == "v7x":
        # Only 64 MiB physical VMEM per TC -> leave headroom; 3.2 TB/s HBM ->
        # tm=512 clears the crossover.
        return gen, 512, 1024, 48 * 1024 * 1024
    # Unknown backend (incl. CPU interpret): safe defaults, compiler-default VMEM.
    return gen, 512, 1024, None


# ----------------------------------------------------------------------------
# One-time weight preparation (hoisted out of the forward path).
# torch.nn.Linear convention: weight is [out_features, in_features], y = x @ W.T
# ----------------------------------------------------------------------------
def prepare_weights(wi_weight, wo_weight, compute_dtype=jnp.bfloat16):
    d_ff, d_model = wi_weight.shape
    assert wo_weight.shape == (d_model, d_ff)
    d_model_p = _round_up(d_model, 128)
    d_ff_p = _round_up(d_ff, 128)
    wi_t = jnp.asarray(wi_weight).T  # [d_model, d_ff]
    wo_t = jnp.asarray(wo_weight).T  # [d_ff, d_model]
    wi_p = jnp.pad(wi_t, ((0, d_model_p - d_model),
                          (0, d_ff_p - d_ff))).astype(compute_dtype)
    wo_p = jnp.pad(wo_t, ((0, d_ff_p - d_ff),
                          (0, d_model_p - d_model))).astype(compute_dtype)
    return wi_p, wo_p


# ----------------------------------------------------------------------------
# Stateless dropout mask from a hash of global coordinates (VPU only, portable).
# TODO(synk): deterministic per seed, but not bitwise-identical to torch's
# dropout RNG stream (no Pallas equivalent of torch's generator).
# ----------------------------------------------------------------------------
def _apply_dropout(h, *, rate, seed, row_off, col_off):
    shape = h.shape
    rows = (jax.lax.broadcasted_iota(jnp.int32, shape, 0) + row_off).astype(jnp.uint32)
    cols = (jax.lax.broadcasted_iota(jnp.int32, shape, 1) + col_off).astype(jnp.uint32)
    bits = (rows * jnp.uint32(0x9E3779B1)
            + cols * jnp.uint32(0x85EBCA77)
            + jnp.uint32(seed & 0xFFFFFFFF))
    bits = bits ^ (bits >> jnp.uint32(16))
    bits = bits * jnp.uint32(0x7FEB352D)
    bits = bits ^ (bits >> jnp.uint32(15))
    bits = bits * jnp.uint32(0x846CA68B)
    bits = bits ^ (bits >> jnp.uint32(16))
    thresh = jnp.uint32(min(int(rate * (2 ** 32)), 2 ** 32 - 1))
    inv_keep = jnp.float32(1.0 / (1.0 - rate))  # fold divide into a multiply
    return jnp.where(bits >= thresh, h * inv_keep, jnp.float32(0.0))


# ----------------------------------------------------------------------------
# Kernels
# ----------------------------------------------------------------------------
def _ffn_kernel_single(x_ref, wi_ref, wo_ref, o_ref, *,
                       dropout_rate, training, seed):
    # Single reduction step (tff == d_ff_p): no accumulator scratch needed.
    tm = x_ref.shape[0]
    x = x_ref[...].astype(wi_ref.dtype)          # in-kernel cast to MXU dtype
    h = jnp.maximum(jnp.dot(x, wi_ref[...],
                            preferred_element_type=jnp.float32), 0.0)
    if training and dropout_rate > 0.0:
        h = _apply_dropout(h, rate=dropout_rate, seed=seed,
                           row_off=pl.program_id(0) * tm, col_off=0)
    o_ref[...] = jnp.dot(h.astype(wo_ref.dtype), wo_ref[...],
                         preferred_element_type=jnp.float32).astype(o_ref.dtype)


def _ffn_kernel_multi(x_ref, wi_ref, wo_ref, o_ref, acc_ref, *,
                      dropout_rate, training, seed):
    # Grid: (row tiles [parallel], d_ff tiles [arbitrary/reduction]).
    k = pl.program_id(1)
    nk = pl.num_programs(1)
    tm = x_ref.shape[0]
    tff = wi_ref.shape[1]

    @pl.when(k == 0)
    def _():
        acc_ref[...] = jnp.zeros_like(acc_ref)

    x = x_ref[...].astype(wi_ref.dtype)
    h = jnp.maximum(jnp.dot(x, wi_ref[...],
                            preferred_element_type=jnp.float32), 0.0)
    if training and dropout_rate > 0.0:
        h = _apply_dropout(h, rate=dropout_rate, seed=seed,
                           row_off=pl.program_id(0) * tm, col_off=k * tff)
    acc_ref[...] += jnp.dot(h.astype(wo_ref.dtype), wo_ref[...],
                            preferred_element_type=jnp.float32)

    @pl.when(k == nk - 1)
    def _():
        o_ref[...] = acc_ref[...].astype(o_ref.dtype)


# ----------------------------------------------------------------------------
# Forward wrapper
# ----------------------------------------------------------------------------
def dense_relu_dense(x, wi_p, wo_p, *, dropout_rate=0.1, training=False,
                     seed=0, tm=None, tff=None):
    """x: [batch, seq, d_model]; wi_p/wo_p: padded+cast weights from prepare_weights."""
    batch, seq, d_model = x.shape
    d_model_p, d_ff_p = wi_p.shape
    assert wo_p.shape == (d_ff_p, d_model_p)
    assert d_model_p >= d_model and d_model_p % 128 == 0 and d_ff_p % 128 == 0

    gen, tm_pref, tff_pref, vmem_limit = _tpu_config()
    if tm is not None:
        tm_pref = max(8, int(tm))

    M = batch * seq

    # --- row tiling: keep padding waste tiny; ensure >=2 tiles on v7x (2 TCs).
    nm = max(1, _cdiv(M, max(8, min(tm_pref, _round_up(M, 8)))))
    if gen == "v7x" and nm == 1 and M > 512:
        nm = 2
    tm_tile = max(8, _round_up(_cdiv(M, nm), 8))
    M_p = nm * tm_tile

    # --- d_ff tiling: full d_ff when modest (nk==1, no accumulator), else the
    #     largest 128-multiple divisor of d_ff_p that is <= tff_pref.
    if tff is not None and d_ff_p % int(tff) == 0:
        tff_tile = int(tff)
    elif d_ff_p <= max(tff_pref, 2048):
        tff_tile = d_ff_p
    else:
        q = d_ff_p // 128
        best = 1
        for d in range(1, q + 1):
            if q % d == 0 and d * 128 <= tff_pref:
                best = d
        tff_tile = best * 128
    nk = d_ff_p // tff_tile

    # --- activations: pad only (native dtype); cast happens inside the kernel.
    x2d = x.reshape(M, d_model)
    if M_p != M or d_model_p != d_model:
        x2d = jnp.pad(x2d, ((0, M_p - M), (0, d_model_p - d_model)))

    # --- cost hint: weights are re-streamed once per row tile.
    w_itemsize = jnp.dtype(wi_p.dtype).itemsize
    x_itemsize = x.dtype.itemsize
    cost = pl.CostEstimate(
        flops=4 * M_p * d_model_p * d_ff_p,
        transcendentals=0,
        bytes_accessed=(M_p * d_model_p * x_itemsize                # x read
                        + M_p * d_model_p * x_itemsize              # out write
                        + nm * (wi_p.size + wo_p.size) * w_itemsize),
    )

    cp_kwargs = {}
    if vmem_limit is not None:
        cp_kwargs["vmem_limit_bytes"] = vmem_limit

    if nk == 1:
        kernel = functools.partial(_ffn_kernel_single,
                                   dropout_rate=float(dropout_rate),
                                   training=bool(training), seed=int(seed))
        grid_spec = pltpu.PrefetchScalarGridSpec(
            num_scalar_prefetch=0,
            grid=(nm,),
            in_specs=[
                pl.BlockSpec((tm_tile, d_model_p), lambda i: (i, 0)),
                pl.BlockSpec((d_model_p, d_ff_p), lambda i: (0, 0)),
                pl.BlockSpec((d_ff_p, d_model_p), lambda i: (0, 0)),
            ],
            out_specs=pl.BlockSpec((tm_tile, d_model_p), lambda i: (i, 0)),
        )
        dims = ("parallel",)
    else:
        kernel = functools.partial(_ffn_kernel_multi,
                                   dropout_rate=float(dropout_rate),
                                   training=bool(training), seed=int(seed))
        grid_spec = pltpu.PrefetchScalarGridSpec(
            num_scalar_prefetch=0,
            grid=(nm, nk),
            in_specs=[
                pl.BlockSpec((tm_tile, d_model_p), lambda i, k: (i, 0)),
                pl.BlockSpec((d_model_p, tff_tile), lambda i, k: (0, k)),
                pl.BlockSpec((tff_tile, d_model_p), lambda i, k: (k, 0)),
            ],
            out_specs=pl.BlockSpec((tm_tile, d_model_p), lambda i, k: (i, 0)),
            scratch_shapes=[pltpu.VMEM((tm_tile, d_model_p), jnp.float32)],
        )
        dims = ("parallel", "arbitrary")

    out2d = pl.pallas_call(
        kernel,
        out_shape=jax.ShapeDtypeStruct((M_p, d_model_p), x.dtype),
        grid_spec=grid_spec,
        compiler_params=pltpu.CompilerParams(dimension_semantics=dims, **cp_kwargs),
        cost_estimate=cost,
    )(x2d, wi_p, wo_p)

    return out2d[:M, :d_model].reshape(batch, seq, d_model)


if __name__ == "__main__":
    # Small config consistent with the module: d_model=32, d_ff=64, batch=2, seq=8.
    batch, seq, d_model, d_ff = 2, 8, 32, 64
    dropout_rate = 0.1

    key = jax.random.PRNGKey(0)
    kx, kwi, kwo = jax.random.split(key, 3)
    x = jax.random.normal(kx, (batch, seq, d_model), dtype=jnp.float32)
    # torch.nn.Linear convention: weight is [out_features, in_features]
    wi_weight = jax.random.normal(kwi, (d_ff, d_model), dtype=jnp.float32) * 0.05
    wo_weight = jax.random.normal(kwo, (d_model, d_ff), dtype=jnp.float32) * 0.05

    ref = jnp.maximum(x @ wi_weight.T, 0.0) @ wo_weight.T

    # ---- Eval mode (dropout = identity, matching module.eval()), f32 MXU feed.
    wi_f32, wo_f32 = prepare_weights(wi_weight, wo_weight, compute_dtype=jnp.float32)
    out_f32 = dense_relu_dense(x, wi_f32, wo_f32, dropout_rate=dropout_rate,
                               training=False)
    jax.block_until_ready(out_f32)
    assert out_f32.shape == (batch, seq, d_model)
    assert jnp.allclose(out_f32, ref, atol=1e-4, rtol=1e-4)

    # ---- Eval mode, bf16 MXU feed (the fast path on v5e/v6e/v7x).
    wi_bf16, wo_bf16 = prepare_weights(wi_weight, wo_weight, compute_dtype=jnp.bfloat16)
    out_bf16 = dense_relu_dense(x, wi_bf16, wo_bf16, dropout_rate=dropout_rate,
                                training=False)
    jax.block_until_ready(out_bf16)
    assert jnp.allclose(out_bf16, ref, atol=3e-2, rtol=3e-2)

    # ---- Multi-step reduction path (forced tff) to exercise the f32 accumulator.
    d_ff2 = 256
    kwi2, kwo2 = jax.random.split(kwi)
    wi2 = jax.random.normal(kwi2, (d_ff2, d_model), dtype=jnp.float32) * 0.05
    wo2 = jax.random.normal(kwo2, (d_model, d_ff2), dtype=jnp.float32) * 0.05
    ref2 = jnp.maximum(x @ wi2.T, 0.0) @ wo2.T
    wi2_p, wo2_p = prepare_weights(wi2, wo2, compute_dtype=jnp.float32)
    out2 = dense_relu_dense(x, wi2_p, wo2_p, dropout_rate=dropout_rate,
                            training=False, tff=128)
    jax.block_until_ready(out2)
    assert jnp.allclose(out2, ref2, atol=1e-4, rtol=1e-4)

    # ---- Training mode exercises the in-kernel dropout path.
    out_train = dense_relu_dense(x, wi_f32, wo_f32, dropout_rate=dropout_rate,
                                 training=True, seed=1234)
    jax.block_until_ready(out_train)
    assert out_train.shape == (batch, seq, d_model)
    assert bool(jnp.all(jnp.isfinite(out_train)))

    print("KERNEL_OK")
</pallas_src>

<mosaic_0001>
module attributes {stable_mosaic.version = 11 : i64} {
  func.func @_ffn_kernel_single(%arg0: i32, %arg1: memref<16x128xf32, #tpu.memory_space<vmem>>, %arg2: memref<128x128xf32, #tpu.memory_space<vmem>>, %arg3: memref<128x128xf32, #tpu.memory_space<vmem>>, %arg4: memref<16x128xf32, #tpu.memory_space<vmem>>) attributes {dimension_semantics = [#tpu.dimension_semantics<parallel>], iteration_bounds = array<i64: 1>, scalar_prefetch = 0 : i64, scratch_operands = 0 : i64, tpu.core_type = #tpu.core_type<tc>, window_params = [{transform_indices = @transform_0, window_bounds = array<i64: 16, 128>}, {pipeline_mode = #tpu.pipeline_mode<synchronous>, transform_indices = @transform_1, window_bounds = array<i64: 128, 128>}, {pipeline_mode = #tpu.pipeline_mode<synchronous>, transform_indices = @transform_2, window_bounds = array<i64: 128, 128>}, {transform_indices = @transform_3, window_bounds = array<i64: 16, 128>}]} {
    %c0 = arith.constant 0 : index
    %c0_0 = arith.constant 0 : index
    %0 = vector.load %arg1[%c0, %c0_0] : memref<16x128xf32, #tpu.memory_space<vmem>>, vector<16x128xf32>
    %c0_1 = arith.constant 0 : index
    %c0_2 = arith.constant 0 : index
    %1 = vector.load %arg2[%c0_1, %c0_2] : memref<128x128xf32, #tpu.memory_space<vmem>>, vector<128x128xf32>
    %cst = arith.constant dense<0.000000e+00> : vector<16x128xf32>
    %2 = tpu.matmul %0, %1, %cst {dimension_numbers = #tpu.dot_dimension_numbers<[1], [0], [0], [1], [0, 0, 1, 1], [], []>} : vector<16x128xf32>, vector<128x128xf32>, vector<16x128xf32> -> vector<16x128xf32>
    %cst_3 = arith.constant 0.000000e+00 : f32
    %3 = vector.broadcast %cst_3 : f32 to vector<16x128xf32>
    %4 = arith.maximumf %2, %3 : vector<16x128xf32>
    %c0_4 = arith.constant 0 : index
    %c0_5 = arith.constant 0 : index
    %5 = vector.load %arg3[%c0_4, %c0_5] : memref<128x128xf32, #tpu.memory_space<vmem>>, vector<128x128xf32>
    %cst_6 = arith.constant dense<0.000000e+00> : vector<16x128xf32>
    %6 = tpu.matmul %4, %5, %cst_6 {dimension_numbers = #tpu.dot_dimension_numbers<[1], [0], [0], [1], [0, 0, 1, 1], [], []>} : vector<16x128xf32>, vector<128x128xf32>, vector<16x128xf32> -> vector<16x128xf32>
    %c0_7 = arith.constant 0 : index
    %c0_8 = arith.constant 0 : index
    %7 = vector.load %arg4[%c0_7, %c0_8] : memref<16x128xf32, #tpu.memory_space<vmem>>, vector<16x128xf32>
    tpu.vector_store %arg4[%c0_7, %c0_8], %6 {strides = array<i32>} : memref<16x128xf32, #tpu.memory_space<vmem>>, vector<16x128xf32>,
    return
  }
  func.func @transform_0(%arg0: i32) -> (i32, i32) {
    %c0_i32 = arith.constant 0 : i32
    %c0_i32_0 = arith.constant 0 : i32
    return %arg0, %c0_i32 : i32, i32
  }
  func.func @transform_1(%arg0: i32) -> (i32, i32) {
    %c0_i32 = arith.constant 0 : i32
    %c0_i32_0 = arith.constant 0 : i32
    %c0_i32_1 = arith.constant 0 : i32
    return %c0_i32, %c0_i32_0 : i32, i32
  }
  func.func @transform_2(%arg0: i32) -> (i32, i32) {
    %c0_i32 = arith.constant 0 : i32
    %c0_i32_0 = arith.constant 0 : i32
    %c0_i32_1 = arith.constant 0 : i32
    return %c0_i32, %c0_i32_0 : i32, i32
  }
  func.func @transform_3(%arg0: i32) -> (i32, i32) {
    %c0_i32 = arith.constant 0 : i32
    %c0_i32_0 = arith.constant 0 : i32
    return %arg0, %c0_i32 : i32, i32
  }
}

</mosaic_0001>

<bundles_post_ra>
// kernel: tpu_custom_call.1
= control target key start
LH: loop header
LB: loop body
LE: loop exit
PB: predicated region body
PF: predicated region fallthrough
CT: control target
= control target key end

     0   :  { %8 = vsyncpa [#allocation3], 0  ;;  %s510_s0 = inlined_call_operand.hbm [shape: f32[16,128], index: 0, kind: input, shape index: {}]   ;;  %s511_s1 = inlined_call_operand.hbm [shape: f32[128,128], index: 1, kind: input, shape index: {}]   ;;  %s512_s2 = inlined_call_operand.hbm [shape: f32[128,128], index: 2, kind: input, shape index: {}]   ;;  %s513_s3 = inlined_call_operand.hbm [shape: f32[16,128], index: 3, kind: output, shape index: {}]  }
   0x1   :  { %9 = vsyncpa [#allocation6], 0 }
   0x2   :  { %10 = vsyncpa [#allocation4], 0  ;;  %s460_s12 = smov [#allocation5]   ;;  %s461_s14 = smov [#allocation2]  }
   0x3   :  { %s28_s13 = sshll.u32 %s460_s12, 4  ;;  %s16_s15 = sshll.u32 %s461_s14, 4  ;;  %s29_s13 = int_to_ptr.vmem [resolvable:$true] %s28_s13  ;;  %s17_s15 = int_to_ptr.vmem [resolvable:$true] %s16_s15 }
   0x4   :  { %s382_s16 = scalar_lea.vmem %s29_s13, 2048  ;;  %p387_p1 = scmp.lt.s32.totalorder %s29_s13, %s29_s13 }
   0x5   :  { %p383_p0 = scmp.ne.s32.totalorder %s29_s13, %s382_s16  ;;  %p388_p2 = scmp.lt.s32.totalorder %s382_s16, %s382_s16 }
   0x7   :  { %p389_p3 = por %p388_p2, %p387_p1 }
   0x9   :  { %p390_p4 = pnand %p389_p3, %p383_p0 }
   0xb   :  { %393 = shalt.err (!%p390_p4)
}
   0xc   :  { %s462_s17 = smov 128   ;;  %s463_s18 = smov 8  }
   0xd   :  { %34 = dma.hbm_to_vmem [thread:$0]  %s511_s1, 2048, %s29_s13, [#allocation6], %s462_s17, %s462_s17, %s463_s18  }
   0xe   :  { %s402_s21 = scalar_lea.vmem %s17_s15, 256  ;;  %p407_p6 = scmp.lt.s32.totalorder %s17_s15, %s17_s15 }
   0xf   :  { %p403_p5 = scmp.ne.s32.totalorder %s17_s15, %s402_s21  ;;  %p408_p7 = scmp.lt.s32.totalorder %s402_s21, %s402_s21 }
  0x11   :  { %p409_p8 = por %p408_p7, %p407_p6 }
  0x13   :  { %p410_p9 = pnand %p409_p8, %p403_p5 }
  0x15   :  { %413 = shalt.err (!%p410_p9)
}
  0x16   :  { %22 = dma.hbm_to_vmem [thread:$0]  %s510_s0, 256, %s17_s15, [#allocation3], %s462_s17, %s462_s17, %s463_s18  }
  0x17   :  { %s464_s24 = smov [#allocation7]  }
  0x18   :  { %s40_s25 = sshll.u32 %s464_s24, 4  ;;  %s41_s25 = int_to_ptr.vmem [resolvable:$true] %s40_s25 }
  0x19   :  { %s422_s26 = scalar_lea.vmem %s41_s25, 2048  ;;  %p427_p11 = scmp.lt.s32.totalorder %s41_s25, %s41_s25 }
  0x1a   :  { %p423_p10 = scmp.ne.s32.totalorder %s41_s25, %s422_s26  ;;  %p428_p12 = scmp.lt.s32.totalorder %s422_s26, %s422_s26 }
  0x1c   :  { %p429_p13 = por %p428_p12, %p427_p11 }
  0x1e   :  { %p430_p0 = pnand %p429_p13, %p423_p10 }
  0x20   :  { %433 = shalt.err (!%p430_p0)
}
  0x21   :  { %46 = dma.hbm_to_vmem [thread:$0]  %s512_s2, 2048, %s41_s25, [#allocation6], %s462_s17, %s462_s17, %s463_s18  }
  0x22   :  { %454 = dma.done.wait [#allocation3], 256  }
  0x23   :  { %455 = vsyncadd [#allocation3], 4294967040 }
  0x24   :  { %456 = dma.done.wait [#allocation6], 4096  }
  0x25   :  { %457 = vsyncadd [#allocation6], 4294963200  ;;  %v73_v0 = vld [vmem:[#allocation5 + $0x78] sm:$0xff]  ;;  %v72_v1 = vld [vmem:[#allocation5 + $0x70] sm:$0xff]  ;;  %s465_s0 = smov [#allocation8]  }
  0x26   :  { %298 = vmatprep.subr.mxu0 %v73_v0  ;;  %v71_v2 = vld [vmem:[#allocation5 + $0x68] sm:$0xff]  ;;  %v70_v3 = vld [vmem:[#allocation5 + $0x60] sm:$0xff]  ;;  %v56_v4 = vld [vmem:[#allocation2] sm:$0xff]  ;;  %s249_s2 = sshll.u32 %s465_s0, 4  ;;  %s250_s2 = int_to_ptr.vmem [resolvable:$true] %s249_s2 }
  0x27   :  { %299 = vmatpush3.msra.mxu0 %v73_v0  ;;  %v69_v5 = vld [vmem:[#allocation5 + $0x58] sm:$0xff]  ;;  %330 = vmatprep.mubr.f32.mxu0 %v56_v4  ;;  %v165_v7 = vld [vmem:[#allocation7 + $0x70] sm:$0xff]  ;;  %v164_v9 = vld [vmem:[#allocation7 + $0x68] sm:$0xff]  ;;  %s434_s28 = scalar_lea.vmem %s250_s2, 256  ;;  %p439_p2 = scmp.lt.s32.totalorder %s250_s2, %s250_s2 }
  0x28   :  { %300 = vmatprep.subr.mxu0 %v72_v1  ;;  %v166_v6 = vld [vmem:[#allocation7 + $0x78] sm:$0xff]  ;;  %v68_v8 = vld [vmem:[#allocation5 + $0x50] sm:$0xff]  ;;  %v67_v10 = vld [vmem:[#allocation5 + $0x48] sm:$0xff]  ;;  %p435_p1 = scmp.ne.s32.totalorder %s250_s2, %s434_s28  ;;  %p440_p3 = scmp.lt.s32.totalorder %s434_s28, %s434_s28 }
  0x29   :  { %301 = vmatpush3.msra.mxu0 %v72_v1  ;;  %333 = vmatprep.subr.mxu1 %v166_v6  ;;  %v163_v11 = vld [vmem:[#allocation7 + $0x60] sm:$0xff]  ;;  %v162_v13 = vld [vmem:[#allocation7 + $0x58] sm:$0xff]  ;;  %v161_v15 = vld [vmem:[#allocation7 + $0x50] sm:$0xff] }
  0x2a   :  { %302 = vmatprep.subr.mxu0 %v71_v2  ;;  %334 = vmatpush3.msra.mxu1 %v166_v6  ;;  %v66_v12 = vld [vmem:[#allocation5 + $0x40] sm:$0xff]  ;;  %v65_v14 = vld [vmem:[#allocation5 + $0x38] sm:$0xff]  ;;  %v64_v16 = vld [vmem:[#allocation5 + $0x30] sm:$0xff]  ;;  %p441_p4 = por %p440_p3, %p439_p2 }
  0x2b   :  { %303 = vmatpush3.msra.mxu0 %v71_v2  ;;  %335 = vmatprep.subr.mxu1 %v165_v7  ;;  %v160_v17 = vld [vmem:[#allocation7 + $0x48] sm:$0xff]  ;;  %v159_v19 = vld [vmem:[#allocation7 + $0x40] sm:$0xff]  ;;  %v158_v21 = vld [vmem:[#allocation7 + $0x38] sm:$0xff] }
  0x2c   :  { %304 = vmatprep.subr.mxu0 %v70_v3  ;;  %336 = vmatpush3.msra.mxu1 %v165_v7  ;;  %v63_v18 = vld [vmem:[#allocation5 + $0x28] sm:$0xff]  ;;  %v62_v20 = vld [vmem:[#allocation5 + $0x20] sm:$0xff]  ;;  %v61_v22 = vld [vmem:[#allocation5 + $0x18] sm:$0xff]  ;;  %p442_p5 = pnand %p441_p4, %p435_p1 }
  0x2d   :  { %305 = vmatpush3.msra.mxu0 %v70_v3  ;;  %337 = vmatprep.subr.mxu1 %v164_v9  ;;  %v157_v23 = vld [vmem:[#allocation7 + $0x30] sm:$0xff]  ;;  %v156_v25 = vld [vmem:[#allocation7 + $0x28] sm:$0xff]  ;;  %v155_v27 = vld [vmem:[#allocation7 + $0x20] sm:$0xff] }
  0x2e   :  { %306 = vmatprep.subr.mxu0 %v69_v5  ;;  %338 = vmatpush3.msra.mxu1 %v164_v9  ;;  %v60_v24 = vld [vmem:[#allocation5 + $0x10] sm:$0xff]  ;;  %v59_v26 = vld [vmem:[#allocation5 + $0x8] sm:$0xff]  ;;  %v58_v28 = vld [vmem:[#allocation5] sm:$0xff] }
  0x2f   :  { %307 = vmatpush3.msra.mxu0 %v69_v5  ;;  %339 = vmatprep.subr.mxu1 %v163_v11  ;;  %v154_v29 = vld [vmem:[#allocation7 + $0x18] sm:$0xff]  ;;  %v153_v31 = vld [vmem:[#allocation7 + $0x10] sm:$0xff]  ;;  %v152_v32 = vld [vmem:[#allocation7 + $0x8] sm:$0xff] }
  0x30   :  { %308 = vmatprep.subr.mxu0 %v68_v8  ;;  %340 = vmatpush3.msra.mxu1 %v163_v11  ;;  %v57_v30 = vld [vmem:[#allocation2 + $0x8] sm:$0xff]  ;;  %v151_v33 = vld [vmem:[#allocation7] sm:$0xff] }
  0x31   :  { %309 = vmatpush3.msra.mxu0 %v68_v8  ;;  %341 = vmatprep.subr.mxu1 %v162_v13 }
  0x32   :  { %310 = vmatprep.subr.mxu0 %v67_v10  ;;  %342 = vmatpush3.msra.mxu1 %v162_v13 }
  0x33   :  { %311 = vmatpush3.msra.mxu0 %v67_v10  ;;  %343 = vmatprep.subr.mxu1 %v161_v15 }
  0x34   :  { %312 = vmatprep.subr.mxu0 %v66_v12  ;;  %344 = vmatpush3.msra.mxu1 %v161_v15 }
  0x35   :  { %313 = vmatpush3.msra.mxu0 %v66_v12  ;;  %345 = vmatprep.subr.mxu1 %v160_v17 }
  0x36   :  { %314 = vmatprep.subr.mxu0 %v65_v14  ;;  %346 = vmatpush3.msra.mxu1 %v160_v17 }
  0x37   :  { %315 = vmatpush3.msra.mxu0 %v65_v14  ;;  %347 = vmatprep.subr.mxu1 %v159_v19 }
  0x38   :  { %316 = vmatprep.subr.mxu0 %v64_v16  ;;  %348 = vmatpush3.msra.mxu1 %v159_v19 }
  0x39   :  { %317 = vmatpush3.msra.mxu0 %v64_v16  ;;  %349 = vmatprep.subr.mxu1 %v158_v21 }
  0x3a   :  { %318 = vmatprep.subr.mxu0 %v63_v18  ;;  %350 = vmatpush3.msra.mxu1 %v158_v21 }
  0x3b   :  { %319 = vmatpush3.msra.mxu0 %v63_v18  ;;  %351 = vmatprep.subr.mxu1 %v157_v23 }
  0x3c   :  { %320 = vmatprep.subr.mxu0 %v62_v20  ;;  %352 = vmatpush3.msra.mxu1 %v157_v23 }
  0x3d   :  { %321 = vmatpush3.msra.mxu0 %v62_v20  ;;  %353 = vmatprep.subr.mxu1 %v156_v25 }
  0x3e   :  { %322 = vmatprep.subr.mxu0 %v61_v22  ;;  %354 = vmatpush3.msra.mxu1 %v156_v25 }
  0x3f   :  { %323 = vmatpush3.msra.mxu0 %v61_v22  ;;  %355 = vmatprep.subr.mxu1 %v155_v27 }
  0x40   :  { %324 = vmatprep.subr.mxu0 %v60_v24  ;;  %356 = vmatpush3.msra.mxu1 %v155_v27 }
  0x41   :  { %325 = vmatpush3.msra.mxu0 %v60_v24  ;;  %357 = vmatprep.subr.mxu1 %v154_v29 }
  0x42   :  { %326 = vmatprep.subr.mxu0 %v59_v26  ;;  %358 = vmatpush3.msra.mxu1 %v154_v29 }
  0x43   :  { %327 = vmatpush3.msra.mxu0 %v59_v26  ;;  %359 = vmatprep.subr.mxu1 %v153_v31 }
  0x44   :  { %328 = vmatprep.subr.mxu0 %v58_v28  ;;  %360 = vmatpush3.msra.mxu1 %v153_v31 }
  0x45   :  { %329 = vmatpush3.msra.mxu0 %v58_v28  ;;  %361 = vmatprep.subr.mxu1 %v152_v32 }
  0x46   :  { %331 = vmatmul.mubr.f32.vlgmr.msra.gmra.mxu0 %v57_v30  ;;  %362 = vmatpush3.msra.mxu1 %v152_v32 }
  0x47   :  { %363 = vmatprep.subr.mxu1 %v151_v33 }
  0x48   :  { %364 = vmatpush3.msra.mxu1 %v151_v33 }
 0x106   :  { %v332_v34 = vpop.f32.mrf.mxu0 }
 0x107   :  { %v150_v37 = vmax.f32 %v332_v34, 0.0 }
 0x108   :  { %v140_v35 = vpop.f32.mrf.mxu0 }
 0x109   :  { %v149_v36 = vmax.f32 %v140_v35, 0.0 }
 0x10b   :  { %365 = vmatprep.mubr.f32.mxu1 %v149_v36 }
 0x10c   :  { %366 = vmatmul.mubr.f32.vlgmr.msra.gmra.mxu1 %v150_v37 }
 0x1cc   :  { %v367_v38 = vpop.f32.mrf.mxu1 }
 0x1cd   :  { %243 = vst [vmem:[#allocation8 + $0x8] sm:$0xff] %v367_v38 }
 0x1ce   :  { %v233_v39 = vpop.f32.mrf.mxu1 }
 0x1cf   :  { %242 = vst [vmem:[#allocation8] sm:$0xff] %v233_v39 }
 0x1d0   :  { %445 = shalt.err (!%p442_p5)
}
 0x1d1   :  { %255 = dma.vmem_to_hbm [thread:$0]  %s250_s2, 256, %s513_s3, [#allocation4], %s462_s17, %s462_s17, %s463_s18  }
 0x1d2   :  { %458 = dma.done.wait [#allocation4], 256  }
 0x1d3   :  { %459 = vsyncadd [#allocation4], 4294967040 }
 0x1d4   :  { %259 = vsyncpa [#allocation3], 1 }
 0x1d5   :  { %260 = vsyncpa [#allocation6], 1 }
 0x1d6   :  { %261 = vsyncpa [#allocation4], 1 }

</bundles_post_ra>
